<compile_context>
chip_gen: v7x
topology: tpu7x:2x2x1
jax: 0.10.0
libtpu: 0.0.40
codegen_flags: <defaults>
</compile_context>

<pallas_src>
import functools
import math

import jax
import jax.numpy as jnp
from jax.experimental import pallas as pl
from jax.experimental.pallas import tpu as pltpu


def _round_up(x, m):
    return (x + m - 1) // m * m


def _num_tensorcores():
    # v7x exposes 2 TensorCores per chip; default to 1 if the attribute is absent.
    try:
        return max(1, int(getattr(jax.devices()[0], "num_cores", 1)))
    except Exception:
        return 1


def _pick_batch_tile(batch, mm_dtype, min_tiles=None):
    """Pick (batch_tile, padded_batch).

    Tiles are multiples of 16 for sub-32-bit matmul dtypes (bf16 packs 2 rows
    per sublane) and 8 otherwise, capped at 128.  When the chip has >1
    TensorCores, the tile is capped so the parallel batch axis has >=2 grid
    steps (v7x megacore sharding); on single-core chips the tile stays maximal.
    """
    sub = 16 if jnp.dtype(mm_dtype).itemsize < 4 else 8
    bm = min(_round_up(max(batch, 1), sub), 128)
    if min_tiles is None:
        min_tiles = _num_tensorcores()
    if min_tiles > 1:
        cap = _round_up(pl.cdiv(batch, min_tiles), sub)
        bm = max(sub, min(bm, cap))
    bp = _round_up(batch, bm)
    return bm, bp


def _resident_spec(shape, single_buffer):
    """BlockSpec for an operand whose block never changes across the grid."""
    index_map = lambda *_: (0,) * len(shape)
    if single_buffer:
        # Constant block => one buffer is enough; halves its VMEM footprint.
        return pl.BlockSpec(shape, index_map, pipeline_mode=pl.Buffered(1))
    return pl.BlockSpec(shape, index_map)


# --------------------------------------------------------------------------- #
# One-time parameter preparation (hoisted out of the per-timestep path)
# --------------------------------------------------------------------------- #
def prepare_lstm_params(w_ih, w_hh, b_ih, *, matmul_dtype=jnp.bfloat16):
    """Repack PyTorch-layout weights for the kernels.  Call once per model.

    w_ih: [4H, I], w_hh: [4H, H], b_ih: [4H]  (gate order i, f, a, o).
    Returns (wih_t [I, 4Hp], whh_t [Hp, 4Hp], bias [1, 4Hp]) where each gate
    block is zero-padded from H to Hp = round_up(H, 128) output columns (so
    gate slices are 128-lane aligned) and W_hh's contraction rows are padded
    to Hp (so the carried hidden state can stay in its padded layout).
    Weights are stored in `matmul_dtype` (bf16 by default); bias stays f32.
    """
    four_h, inp = w_ih.shape
    hid = four_h // 4
    assert w_hh.shape == (4 * hid, hid)
    assert b_ih.shape == (4 * hid,)
    hp = _round_up(max(hid, 1), 128)
    # TODO(synk): for H < 128, pad 4H jointly to 128 (gate-interleaved layout)
    # instead of per-gate padding, to avoid the 128/H work/byte inflation.
    # TODO(synk): int8 (v5e/v6e) / fp8 (v7x) weight storage + per-gate scales.

    w_ih = jnp.asarray(w_ih, jnp.float32).reshape(4, hid, inp)
    w_hh = jnp.asarray(w_hh, jnp.float32).reshape(4, hid, hid)
    b_ih = jnp.asarray(b_ih, jnp.float32).reshape(4, hid)

    w_ih = jnp.pad(w_ih, ((0, 0), (0, hp - hid), (0, 0)))          # [4, Hp, I]
    w_hh = jnp.pad(w_hh, ((0, 0), (0, hp - hid), (0, hp - hid)))   # [4, Hp, Hp]
    bias = jnp.pad(b_ih, ((0, 0), (0, hp - hid))).reshape(1, 4 * hp)

    wih_t = w_ih.reshape(4 * hp, inp).T.astype(matmul_dtype)       # [I,  4Hp]
    whh_t = w_hh.reshape(4 * hp, hp).T.astype(matmul_dtype)        # [Hp, 4Hp]
    return wih_t, whh_t, bias


# --------------------------------------------------------------------------- #
# Shared gate math (f32; padded lanes stay exactly zero: 0.5*0 + 0.5*0 = 0)
# --------------------------------------------------------------------------- #
def _gate_math(gates, c_prev, hp):
    # TODO(synk): on v6e/v7x run the sigmoid/tanh activations in bf16 (bf16 EUP,
    # ~2x rate) and keep only the c_t accumulation in f32.
    i_g = jax.nn.sigmoid(gates[:, 0 * hp:1 * hp])
    f_g = jax.nn.sigmoid(gates[:, 1 * hp:2 * hp])
    a_g = jnp.tanh(gates[:, 2 * hp:3 * hp])
    o_g = jax.nn.sigmoid(gates[:, 3 * hp:4 * hp])
    c_t = i_g * a_g + f_g * c_prev
    h_t = o_g * jnp.tanh(c_t)
    return h_t, c_t


# --------------------------------------------------------------------------- #
# Kernels
# --------------------------------------------------------------------------- #
def lstm_cell_kernel(x_ref, h_ref, c_ref, wih_ref, whh_ref, b_ref,
                     h_out_ref, c_out_ref):
    """One LSTM cell step on one batch tile (x and h kept as separate operands).

    x_ref  : [bm, I]      matmul-dtype inputs
    h_ref  : [bm, Hp]     matmul-dtype previous hidden state (lane-padded)
    c_ref  : [bm, Hp]     f32 previous cell state
    wih_ref: [I,  4*Hp]   W_ih^T  (gate-major, lane-padded)
    whh_ref: [Hp, 4*Hp]   W_hh^T  (contraction rows padded to Hp)
    b_ref  : [1,  4*Hp]   f32 bias
    """
    hp = c_ref.shape[1]
    gates = jnp.dot(x_ref[...], wih_ref[...], preferred_element_type=jnp.float32)
    gates += jnp.dot(h_ref[...], whh_ref[...], preferred_element_type=jnp.float32)
    gates += b_ref[...]
    h_t, c_t = _gate_math(gates, c_ref[...], hp)
    h_out_ref[...] = h_t.astype(h_out_ref.dtype)
    c_out_ref[...] = c_t


def lstm_seq_kernel(xp_ref, h0_ref, c0_ref, whh_ref,
                    hseq_ref, clast_ref, h_sc, c_sc):
    """Fused LSTM over the whole sequence for one batch tile.

    Grid = (batch_tiles, T); t (axis 1) is "arbitrary" (sequential recurrence),
    W_hh^T stays VMEM-resident (constant index_map), h/c live in VMEM scratch.

    xp_ref   : [1, bm, 4*Hp]  f32 precomputed x @ W_ih^T + b for this timestep
    h0_ref   : [bm, Hp]       matmul-dtype initial hidden state
    c0_ref   : [bm, Hp]       f32 initial cell state
    whh_ref  : [Hp, 4*Hp]     W_hh^T
    hseq_ref : [1, bm, Hp]    per-timestep hidden-state output
    clast_ref: [bm, Hp]       final cell state (written at t == T-1)
    """
    t = pl.program_id(1)
    hp = c_sc.shape[1]

    @pl.when(t == 0)
    def _():
        h_sc[...] = h0_ref[...]
        c_sc[...] = c0_ref[...]

    gates = xp_ref[0] + jnp.dot(h_sc[...], whh_ref[...],
                                preferred_element_type=jnp.float32)
    h_t, c_t = _gate_math(gates, c_sc[...], hp)

    c_sc[...] = c_t
    h_sc[...] = h_t.astype(h_sc.dtype)
    hseq_ref[0] = h_t.astype(hseq_ref.dtype)

    @pl.when(t == pl.num_programs(1) - 1)
    def _():
        clast_ref[...] = c_t


# --------------------------------------------------------------------------- #
# Drivers
# --------------------------------------------------------------------------- #
@functools.partial(jax.jit, static_argnames=("single_buffer",))
def _cell_step_impl(wih_t, whh_t, bias, x, h, c, *, single_buffer):
    batch, inp = x.shape
    hid = h.shape[1]
    hp = whh_t.shape[0]
    mm_dtype = whh_t.dtype
    mm_bytes = jnp.dtype(mm_dtype).itemsize

    bm, bp = _pick_batch_tile(batch, mm_dtype)
    grid = (bp // bm,)

    xq = jnp.pad(x.astype(mm_dtype), ((0, bp - batch), (0, 0)))
    hq = jnp.pad(h.astype(jnp.float32),
                 ((0, bp - batch), (0, hp - hid))).astype(mm_dtype)
    cq = jnp.pad(c.astype(jnp.float32), ((0, bp - batch), (0, hp - hid)))

    w_bytes = (wih_t.size + whh_t.size) * mm_bytes + bias.size * 4
    w_buf = 1 if single_buffer else 2
    tile_bytes = (bm * inp * mm_bytes + bm * hp * (mm_bytes + 4)
                  + 2 * bm * hp * 4)
    vmem_limit = int(max(32 << 20,
                         min(w_buf * w_bytes + 2 * tile_bytes + (4 << 20),
                             96 << 20)))

    cost = pl.CostEstimate(
        flops=int(2 * bp * (inp + hp) * 4 * hp + 10 * bp * hp),
        transcendentals=int(5 * bp * hp),
        bytes_accessed=int(xq.size * mm_bytes + hq.size * mm_bytes
                           + cq.size * 4 + w_bytes + 2 * bp * hp * 4),
    )

    h_t, c_t = pl.pallas_call(
        lstm_cell_kernel,
        out_shape=(jax.ShapeDtypeStruct((bp, hp), jnp.float32),
                   jax.ShapeDtypeStruct((bp, hp), jnp.float32)),
        grid=grid,
        in_specs=[
            pl.BlockSpec((bm, inp), lambda b: (b, 0)),        # x tile
            pl.BlockSpec((bm, hp), lambda b: (b, 0)),         # h tile
            pl.BlockSpec((bm, hp), lambda b: (b, 0)),         # c tile
            _resident_spec((inp, 4 * hp), single_buffer),     # W_ih^T
            _resident_spec((hp, 4 * hp), single_buffer),      # W_hh^T
            _resident_spec((1, 4 * hp), single_buffer),       # bias
        ],
        out_specs=(pl.BlockSpec((bm, hp), lambda b: (b, 0)),
                   pl.BlockSpec((bm, hp), lambda b: (b, 0))),
        input_output_aliases={2: 1},   # reuse padded-c HBM buffer for c_t
        compiler_params=pltpu.CompilerParams(
            dimension_semantics=("parallel",),
            vmem_limit_bytes=vmem_limit),
        cost_estimate=cost,
    )(xq, hq, cq, wih_t, whh_t, bias)

    return h_t[:batch, :hid], c_t[:batch, :hid]


@functools.partial(jax.jit, static_argnames=("single_buffer",))
def _sequence_impl(wih_t, whh_t, bias, x_seq, h0, c0, *, single_buffer):
    seq_len, batch, inp = x_seq.shape
    hid = h0.shape[1]
    hp = whh_t.shape[0]
    mm_dtype = whh_t.dtype
    mm_bytes = jnp.dtype(mm_dtype).itemsize

    bm, bp = _pick_batch_tile(batch, mm_dtype)
    grid = (bp // bm, seq_len)

    # One big MXU matmul for the x-projection of every timestep, bias folded in.
    xp = jnp.dot(x_seq.reshape(seq_len * batch, inp).astype(mm_dtype), wih_t,
                 preferred_element_type=jnp.float32)
    xp = xp.reshape(seq_len, batch, 4 * hp) + bias
    xp = jnp.pad(xp, ((0, 0), (0, bp - batch), (0, 0)))            # [T, Bp, 4Hp]

    h0p = jnp.pad(h0.astype(jnp.float32),
                  ((0, bp - batch), (0, hp - hid))).astype(mm_dtype)
    c0p = jnp.pad(c0.astype(jnp.float32), ((0, bp - batch), (0, hp - hid)))

    w_bytes = whh_t.size * mm_bytes
    w_buf = 1 if single_buffer else 2
    tile_bytes = (bm * 4 * hp * 4                 # xp tile
                  + bm * hp * (mm_bytes + 4)      # h0 / c0 tiles
                  + bm * hp * (mm_bytes + 4))     # h_seq / c_last tiles
    scratch_bytes = bm * hp * (mm_bytes + 4)
    vmem_limit = int(max(32 << 20,
                         min(w_buf * w_bytes + 2 * tile_bytes + scratch_bytes
                             + (4 << 20), 96 << 20)))

    cost = pl.CostEstimate(
        flops=int(2 * seq_len * bp * hp * 4 * hp + 10 * seq_len * bp * hp),
        transcendentals=int(5 * seq_len * bp * hp),
        bytes_accessed=int(xp.size * 4 + w_bytes + 2 * bp * hp * (4 + mm_bytes)
                           + seq_len * bp * hp * mm_bytes),
    )

    h_seq, c_last = pl.pallas_call(
        lstm_seq_kernel,
        out_shape=(jax.ShapeDtypeStruct((seq_len, bp, hp), mm_dtype),
                   jax.ShapeDtypeStruct((bp, hp), jnp.float32)),
        grid=grid,
        in_specs=[
            pl.BlockSpec((1, bm, 4 * hp), lambda b, t: (t, b, 0)),  # xp tile
            pl.BlockSpec((bm, hp), lambda b, t: (b, 0)),            # h0 tile
            pl.BlockSpec((bm, hp), lambda b, t: (b, 0)),            # c0 tile
            _resident_spec((hp, 4 * hp), single_buffer),            # W_hh^T
        ],
        out_specs=(pl.BlockSpec((1, bm, hp), lambda b, t: (t, b, 0)),
                   pl.BlockSpec((bm, hp), lambda b, t: (b, 0))),
        scratch_shapes=[pltpu.VMEM((bm, hp), mm_dtype),     # carried h
                        pltpu.VMEM((bm, hp), jnp.float32)], # carried c
        input_output_aliases={2: 1},   # reuse padded-c0 HBM buffer for c_last
        compiler_params=pltpu.CompilerParams(
            dimension_semantics=("parallel", "arbitrary"),
            vmem_limit_bytes=vmem_limit),
        cost_estimate=cost,
    )(xp, h0p, c0p, whh_t)

    return h_seq[:, :batch, :hid], c_last[:batch, :hid]


# --------------------------------------------------------------------------- #
# Public API
# --------------------------------------------------------------------------- #
def lstm_cell_step(params, x, h, c):
    """One LSTM_quantized_cell forward (norm=None); returns (h_t, (h_t, c_t))."""
    wih_t, whh_t, bias = params
    try:
        h_t, c_t = _cell_step_impl(wih_t, whh_t, bias, x, h, c,
                                   single_buffer=True)
    except Exception:  # pipeline_mode=pl.Buffered unsupported -> default buffers
        h_t, c_t = _cell_step_impl(wih_t, whh_t, bias, x, h, c,
                                   single_buffer=False)
    return h_t, (h_t, c_t)


def lstm_sequence_forward(params, x_seq, h0, c0):
    """Run the cell over a whole [T, B, I] sequence in one fused Pallas kernel.

    Returns (h_seq [T, B, H] in the matmul dtype, (h_seq[-1], c_T [B, H] f32)).
    """
    wih_t, whh_t, bias = params
    try:
        h_seq, c_t = _sequence_impl(wih_t, whh_t, bias, x_seq, h0, c0,
                                    single_buffer=True)
    except Exception:
        h_seq, c_t = _sequence_impl(wih_t, whh_t, bias, x_seq, h0, c0,
                                    single_buffer=False)
    return h_seq, (h_seq[-1], c_t)


def lstm_quantized_cell_forward(x, h, c, w_ih, w_hh, b_ih,
                                *, matmul_dtype=jnp.bfloat16):
    """Convenience wrapper with the original per-call signature (single step)."""
    params = prepare_lstm_params(w_ih, w_hh, b_ih, matmul_dtype=matmul_dtype)
    return lstm_cell_step(params, x, h, c)


# --------------------------------------------------------------------------- #
# Pure-JAX references (mirror the PyTorch forward, f32)
# --------------------------------------------------------------------------- #
def _reference_cell(x, h, c, w_ih, w_hh, b_ih):
    gates = x @ w_ih.T + h @ w_hh.T + b_ih
    i, f, a, o = jnp.split(gates, 4, axis=1)
    c_t = jax.nn.sigmoid(i) * jnp.tanh(a) + jax.nn.sigmoid(f) * c
    h_t = jax.nn.sigmoid(o) * jnp.tanh(c_t)
    return h_t, c_t


def _reference_sequence(x_seq, h0, c0, w_ih, w_hh, b_ih):
    def step(carry, x):
        h, c = carry
        h_t, c_t = _reference_cell(x, h, c, w_ih, w_hh, b_ih)
        return (h_t, c_t), h_t

    (_, c_t), h_seq = jax.lax.scan(step, (h0, c0), x_seq)
    return h_seq, c_t


if __name__ == "__main__":
    import numpy as np

    # Small shapes consistent with the module: batch=8, input=32, hidden=32, T=8.
    B, I, H, T = 8, 32, 32, 8
    key = jax.random.PRNGKey(0)
    kx, kh, kc, ks, k1, k2, k3 = jax.random.split(key, 7)

    x = jax.random.normal(kx, (B, I), jnp.float32)
    h = jax.random.normal(kh, (B, H), jnp.float32)
    c = jax.random.normal(kc, (B, H), jnp.float32)
    x_seq = jax.random.normal(ks, (T, B, I), jnp.float32)

    # Parameter init matching reset_parameters(): uniform(-stdv, stdv).
    stdv = 1.0 / math.sqrt(H)
    w_ih = jax.random.uniform(k1, (4 * H, I), jnp.float32, -stdv, stdv)
    w_hh = jax.random.uniform(k2, (4 * H, H), jnp.float32, -stdv, stdv)
    b_ih = jax.random.uniform(k3, (4 * H,), jnp.float32, -stdv, stdv)

    h_ref, c_ref = _reference_cell(x, h, c, w_ih, w_hh, b_ih)
    hs_ref, cT_ref = _reference_sequence(x_seq, h, c, w_ih, w_hh, b_ih)

    def _np(a):
        return np.asarray(jnp.asarray(a, jnp.float32))

    # ---- f32 matmul path: tight check against the reference -----------------
    p32 = prepare_lstm_params(w_ih, w_hh, b_ih, matmul_dtype=jnp.float32)

    h_t, (h_t2, c_t) = lstm_cell_step(p32, x, h, c)
    jax.block_until_ready((h_t, c_t))
    np.testing.assert_allclose(_np(h_t), _np(h_ref), rtol=1e-4, atol=1e-4)
    np.testing.assert_allclose(_np(c_t), _np(c_ref), rtol=1e-4, atol=1e-4)
    np.testing.assert_allclose(_np(h_t2), _np(h_t), rtol=0, atol=0)

    h_seq, (h_last, c_T) = lstm_sequence_forward(p32, x_seq, h, c)
    jax.block_until_ready((h_seq, c_T))
    np.testing.assert_allclose(_np(h_seq), _np(hs_ref), rtol=5e-4, atol=5e-4)
    np.testing.assert_allclose(_np(c_T), _np(cT_ref), rtol=5e-4, atol=5e-4)

    # ---- default bf16 matmul path (production config): loose check ----------
    pbf = prepare_lstm_params(w_ih, w_hh, b_ih, matmul_dtype=jnp.bfloat16)

    h_b, (_, c_b) = lstm_cell_step(pbf, x, h, c)
    jax.block_until_ready((h_b, c_b))
    np.testing.assert_allclose(_np(h_b), _np(h_ref), rtol=5e-2, atol=5e-2)
    np.testing.assert_allclose(_np(c_b), _np(c_ref), rtol=5e-2, atol=5e-2)

    hs_b, (_, cT_b) = lstm_sequence_forward(pbf, x_seq, h, c)
    jax.block_until_ready((hs_b, cT_b))
    np.testing.assert_allclose(_np(hs_b), _np(hs_ref), rtol=1e-1, atol=1e-1)
    np.testing.assert_allclose(_np(cT_b), _np(cT_ref), rtol=1e-1, atol=1e-1)

    print("KERNEL_OK")
</pallas_src>

<mosaic_0001>
module attributes {stable_mosaic.version = 11 : i64} {
  func.func @lstm_cell_kernel(%arg0: i32, %arg1: memref<8x32xf32, #tpu.memory_space<vmem>>, %arg2: memref<8x128xf32, #tpu.memory_space<vmem>>, %arg3: memref<8x128xf32, #tpu.memory_space<vmem>>, %arg4: memref<32x512xf32, #tpu.memory_space<vmem>>, %arg5: memref<128x512xf32, #tpu.memory_space<vmem>>, %arg6: memref<1x512xf32, #tpu.memory_space<vmem>>, %arg7: memref<8x128xf32, #tpu.memory_space<vmem>>, %arg8: memref<8x128xf32, #tpu.memory_space<vmem>>) attributes {dimension_semantics = [#tpu.dimension_semantics<parallel>], iteration_bounds = array<i64: 1>, scalar_prefetch = 0 : i64, scratch_operands = 0 : i64, tpu.core_type = #tpu.core_type<tc>, window_params = [{transform_indices = @transform_0, window_bounds = array<i64: 8, 32>}, {transform_indices = @transform_1, window_bounds = array<i64: 8, 128>}, {transform_indices = @transform_2, window_bounds = array<i64: 8, 128>}, {pipeline_mode = #tpu.pipeline_mode<synchronous>, transform_indices = @transform_3, window_bounds = array<i64: 32, 512>}, {pipeline_mode = #tpu.pipeline_mode<synchronous>, transform_indices = @transform_4, window_bounds = array<i64: 128, 512>}, {pipeline_mode = #tpu.pipeline_mode<synchronous>, transform_indices = @transform_5, window_bounds = array<i64: 1, 512>}, {transform_indices = @transform_6, window_bounds = array<i64: 8, 128>}, {transform_indices = @transform_7, window_bounds = array<i64: 8, 128>}]} {
    %c0 = arith.constant 0 : index
    %c0_0 = arith.constant 0 : index
    %0 = vector.load %arg1[%c0, %c0_0] : memref<8x32xf32, #tpu.memory_space<vmem>>, vector<8x32xf32>
    %c0_1 = arith.constant 0 : index
    %c0_2 = arith.constant 0 : index
    %1 = vector.load %arg4[%c0_1, %c0_2] : memref<32x512xf32, #tpu.memory_space<vmem>>, vector<32x512xf32>
    %cst = arith.constant dense<0.000000e+00> : vector<8x512xf32>
    %2 = tpu.matmul %0, %1, %cst {dimension_numbers = #tpu.dot_dimension_numbers<[1], [0], [0], [1], [0, 0, 1, 1], [], []>} : vector<8x32xf32>, vector<32x512xf32>, vector<8x512xf32> -> vector<8x512xf32>
    %c0_3 = arith.constant 0 : index
    %c0_4 = arith.constant 0 : index
    %3 = vector.load %arg2[%c0_3, %c0_4] : memref<8x128xf32, #tpu.memory_space<vmem>>, vector<8x128xf32>
    %c0_5 = arith.constant 0 : index
    %c0_6 = arith.constant 0 : index
    %4 = vector.load %arg5[%c0_5, %c0_6] : memref<128x512xf32, #tpu.memory_space<vmem>>, vector<128x512xf32>
    %cst_7 = arith.constant dense<0.000000e+00> : vector<8x512xf32>
    %5 = tpu.matmul %3, %4, %cst_7 {dimension_numbers = #tpu.dot_dimension_numbers<[1], [0], [0], [1], [0, 0, 1, 1], [], []>} : vector<8x128xf32>, vector<128x512xf32>, vector<8x512xf32> -> vector<8x512xf32>
    %6 = arith.addf %2, %5 : vector<8x512xf32>
    %c0_8 = arith.constant 0 : index
    %c0_9 = arith.constant 0 : index
    %7 = vector.load %arg6[%c0_8, %c0_9] : memref<1x512xf32, #tpu.memory_space<vmem>>, vector<1x512xf32>
    %8 = vector.broadcast %7 : vector<1x512xf32> to vector<8x512xf32>
    %9 = arith.addf %6, %8 : vector<8x512xf32>
    %c0_10 = arith.constant 0 : index
    %c0_11 = arith.constant 0 : index
    %10 = vector.load %arg3[%c0_10, %c0_11] : memref<8x128xf32, #tpu.memory_space<vmem>>, vector<8x128xf32>
    %11 = vector.extract_strided_slice %9 {offsets = [0, 0], sizes = [8, 128], strides = [1, 1]} : vector<8x512xf32> to vector<8x128xf32>
    %12 = arith.negf %11 : vector<8x128xf32>
    %13 = math.exp %12 : vector<8x128xf32>
    %cst_12 = arith.constant 1.000000e+00 : f32
    %14 = vector.broadcast %cst_12 : f32 to vector<8x128xf32>
    %15 = arith.addf %14, %13 : vector<8x128xf32>
    %16 = arith.divf %14, %15 : vector<8x128xf32>
    %17 = vector.extract_strided_slice %9 {offsets = [0, 128], sizes = [8, 128], strides = [1, 1]} : vector<8x512xf32> to vector<8x128xf32>
    %18 = arith.negf %17 : vector<8x128xf32>
    %19 = math.exp %18 : vector<8x128xf32>
    %cst_13 = arith.constant 1.000000e+00 : f32
    %20 = vector.broadcast %cst_13 : f32 to vector<8x128xf32>
    %21 = arith.addf %20, %19 : vector<8x128xf32>
    %22 = arith.divf %20, %21 : vector<8x128xf32>
    %23 = vector.extract_strided_slice %9 {offsets = [0, 256], sizes = [8, 128], strides = [1, 1]} : vector<8x512xf32> to vector<8x128xf32>
    %24 = math.tanh %23 : vector<8x128xf32>
    %25 = vector.extract_strided_slice %9 {offsets = [0, 384], sizes = [8, 128], strides = [1, 1]} : vector<8x512xf32> to vector<8x128xf32>
    %26 = arith.negf %25 : vector<8x128xf32>
    %27 = math.exp %26 : vector<8x128xf32>
    %cst_14 = arith.constant 1.000000e+00 : f32
    %28 = vector.broadcast %cst_14 : f32 to vector<8x128xf32>
    %29 = arith.addf %28, %27 : vector<8x128xf32>
    %30 = arith.divf %28, %29 : vector<8x128xf32>
    %31 = arith.mulf %16, %24 : vector<8x128xf32>
    %32 = arith.mulf %22, %10 : vector<8x128xf32>
    %33 = arith.addf %31, %32 : vector<8x128xf32>
    %34 = math.tanh %33 : vector<8x128xf32>
    %35 = arith.mulf %30, %34 : vector<8x128xf32>
    %c0_15 = arith.constant 0 : index
    %c0_16 = arith.constant 0 : index
    %36 = vector.load %arg7[%c0_15, %c0_16] : memref<8x128xf32, #tpu.memory_space<vmem>>, vector<8x128xf32>
    tpu.vector_store %arg7[%c0_15, %c0_16], %35 {strides = array<i32>} : memref<8x128xf32, #tpu.memory_space<vmem>>, vector<8x128xf32>,
    %c0_17 = arith.constant 0 : index
    %c0_18 = arith.constant 0 : index
    %37 = vector.load %arg8[%c0_17, %c0_18] : memref<8x128xf32, #tpu.memory_space<vmem>>, vector<8x128xf32>
    tpu.vector_store %arg8[%c0_17, %c0_18], %33 {strides = array<i32>} : memref<8x128xf32, #tpu.memory_space<vmem>>, vector<8x128xf32>,
    return
  }
  func.func @transform_0(%arg0: i32) -> (i32, i32) {
    %c0_i32 = arith.constant 0 : i32
    %c0_i32_0 = arith.constant 0 : i32
    return %arg0, %c0_i32 : i32, i32
  }
  func.func @transform_1(%arg0: i32) -> (i32, i32) {
    %c0_i32 = arith.constant 0 : i32
    %c0_i32_0 = arith.constant 0 : i32
    return %arg0, %c0_i32 : i32, i32
  }
  func.func @transform_2(%arg0: i32) -> (i32, i32) {
    %c0_i32 = arith.constant 0 : i32
    %c0_i32_0 = arith.constant 0 : i32
    return %arg0, %c0_i32 : i32, i32
  }
  func.func @transform_3(%arg0: i32) -> (i32, i32) {
    %c0_i32 = arith.constant 0 : i32
    %c0_i32_0 = arith.constant 0 : i32
    %c0_i32_1 = arith.constant 0 : i32
    return %c0_i32, %c0_i32_0 : i32, i32
  }
  func.func @transform_4(%arg0: i32) -> (i32, i32) {
    %c0_i32 = arith.constant 0 : i32
    %c0_i32_0 = arith.constant 0 : i32
    %c0_i32_1 = arith.constant 0 : i32
    return %c0_i32, %c0_i32_0 : i32, i32
  }
  func.func @transform_5(%arg0: i32) -> (i32, i32) {
    %c0_i32 = arith.constant 0 : i32
    %c0_i32_0 = arith.constant 0 : i32
    %c0_i32_1 = arith.constant 0 : i32
    return %c0_i32, %c0_i32_0 : i32, i32
  }
  func.func @transform_6(%arg0: i32) -> (i32, i32) {
    %c0_i32 = arith.constant 0 : i32
    %c0_i32_0 = arith.constant 0 : i32
    return %arg0, %c0_i32 : i32, i32
  }
  func.func @transform_7(%arg0: i32) -> (i32, i32) {
    %c0_i32 = arith.constant 0 : i32
    %c0_i32_0 = arith.constant 0 : i32
    return %arg0, %c0_i32 : i32, i32
  }
}

module attributes {stable_mosaic.version = 11 : i64} {
  func.func @lstm_cell_kernel(%arg0: i32, %arg1: memref<8x32xf32, #tpu.memory_space<vmem>>, %arg2: memref<8x128xf32, #tpu.memory_space<vmem>>, %arg3: memref<8x128xf32, #tpu.memory_space<vmem>>, %arg4: memref<32x512xf32, #tpu.memory_space<vmem>>, %arg5: memref<128x512xf32, #tpu.memory_space<vmem>>, %arg6: memref<1x512xf32, #tpu.memory_space<vmem>>, %arg7: memref<8x128xf32, #tpu.memory_space<vmem>>, %arg8: memref<8x128xf32, #tpu.memory_space<vmem>>) attributes {dimension_semantics = [#tpu.dimension_semantics<parallel>], iteration_bounds = array<i64: 1>, scalar_prefetch = 0 : i64, scratch_operands = 0 : i64, tpu.core_type = #tpu.core_type<tc>, window_params = [{transform_indices = @transform_0, window_bounds = array<i64: 8, 32>}, {transform_indices = @transform_1, window_bounds = array<i64: 8, 128>}, {transform_indices = @transform_2, window_bounds = array<i64: 8, 128>}, {pipeline_mode = #tpu.pipeline_mode<synchronous>, transform_indices = @transform_3, window_bounds = array<i64: 32, 512>}, {pipeline_mode = #tpu.pipeline_mode<synchronous>, transform_indices = @transform_4, window_bounds = array<i64: 128, 512>}, {pipeline_mode = #tpu.pipeline_mode<synchronous>, transform_indices = @transform_5, window_bounds = array<i64: 1, 512>}, {transform_indices = @transform_6, window_bounds = array<i64: 8, 128>}, {transform_indices = @transform_7, window_bounds = array<i64: 8, 128>}]} {
    %c0 = arith.constant 0 : index
    %c0_0 = arith.constant 0 : index
    %0 = vector.load %arg1[%c0, %c0_0] : memref<8x32xf32, #tpu.memory_space<vmem>>, vector<8x32xf32>
    %c0_1 = arith.constant 0 : index
    %c0_2 = arith.constant 0 : index
    %1 = vector.load %arg4[%c0_1, %c0_2] : memref<32x512xf32, #tpu.memory_space<vmem>>, vector<32x512xf32>
    %cst = arith.constant dense<0.000000e+00> : vector<8x512xf32>
    %2 = tpu.matmul %0, %1, %cst {dimension_numbers = #tpu.dot_dimension_numbers<[1], [0], [0], [1], [0, 0, 1, 1], [], []>} : vector<8x32xf32>, vector<32x512xf32>, vector<8x512xf32> -> vector<8x512xf32>
    %c0_3 = arith.constant 0 : index
    %c0_4 = arith.constant 0 : index
    %3 = vector.load %arg2[%c0_3, %c0_4] : memref<8x128xf32, #tpu.memory_space<vmem>>, vector<8x128xf32>
    %c0_5 = arith.constant 0 : index
    %c0_6 = arith.constant 0 : index
    %4 = vector.load %arg5[%c0_5, %c0_6] : memref<128x512xf32, #tpu.memory_space<vmem>>, vector<128x512xf32>
    %cst_7 = arith.constant dense<0.000000e+00> : vector<8x512xf32>
    %5 = tpu.matmul %3, %4, %cst_7 {dimension_numbers = #tpu.dot_dimension_numbers<[1], [0], [0], [1], [0, 0, 1, 1], [], []>} : vector<8x128xf32>, vector<128x512xf32>, vector<8x512xf32> -> vector<8x512xf32>
    %6 = arith.addf %2, %5 : vector<8x512xf32>
    %c0_8 = arith.constant 0 : index
    %c0_9 = arith.constant 0 : index
    %7 = vector.load %arg6[%c0_8, %c0_9] : memref<1x512xf32, #tpu.memory_space<vmem>>, vector<1x512xf32>
    %8 = vector.broadcast %7 : vector<1x512xf32> to vector<8x512xf32>
    %9 = arith.addf %6, %8 : vector<8x512xf32>
    %c0_10 = arith.constant 0 : index
    %c0_11 = arith.constant 0 : index
    %10 = vector.load %arg3[%c0_10, %c0_11] : memref<8x128xf32, #tpu.memory_space<vmem>>, vector<8x128xf32>
    %11 = vector.extract_strided_slice %9 {offsets = [0, 0], sizes = [8, 128], strides = [1, 1]} : vector<8x512xf32> to vector<8x128xf32>
    %12 = arith.negf %11 : vector<8x128xf32>
    %13 = math.exp %12 : vector<8x128xf32>
    %cst_12 = arith.constant 1.000000e+00 : f32
    %14 = vector.broadcast %cst_12 : f32 to vector<8x128xf32>
    %15 = arith.addf %14, %13 : vector<8x128xf32>
    %16 = arith.divf %14, %15 : vector<8x128xf32>
    %17 = vector.extract_strided_slice %9 {offsets = [0, 128], sizes = [8, 128], strides = [1, 1]} : vector<8x512xf32> to vector<8x128xf32>
    %18 = arith.negf %17 : vector<8x128xf32>
    %19 = math.exp %18 : vector<8x128xf32>
    %cst_13 = arith.constant 1.000000e+00 : f32
    %20 = vector.broadcast %cst_13 : f32 to vector<8x128xf32>
    %21 = arith.addf %20, %19 : vector<8x128xf32>
    %22 = arith.divf %20, %21 : vector<8x128xf32>
    %23 = vector.extract_strided_slice %9 {offsets = [0, 256], sizes = [8, 128], strides = [1, 1]} : vector<8x512xf32> to vector<8x128xf32>
    %24 = math.tanh %23 : vector<8x128xf32>
    %25 = vector.extract_strided_slice %9 {offsets = [0, 384], sizes = [8, 128], strides = [1, 1]} : vector<8x512xf32> to vector<8x128xf32>
    %26 = arith.negf %25 : vector<8x128xf32>
    %27 = math.exp %26 : vector<8x128xf32>
    %cst_14 = arith.constant 1.000000e+00 : f32
    %28 = vector.broadcast %cst_14 : f32 to vector<8x128xf32>
    %29 = arith.addf %28, %27 : vector<8x128xf32>
    %30 = arith.divf %28, %29 : vector<8x128xf32>
    %31 = arith.mulf %16, %24 : vector<8x128xf32>
    %32 = arith.mulf %22, %10 : vector<8x128xf32>
    %33 = arith.addf %31, %32 : vector<8x128xf32>
    %34 = math.tanh %33 : vector<8x128xf32>
    %35 = arith.mulf %30, %34 : vector<8x128xf32>
    %c0_15 = arith.constant 0 : index
    %c0_16 = arith.constant 0 : index
    %36 = vector.load %arg7[%c0_15, %c0_16] : memref<8x128xf32, #tpu.memory_space<vmem>>, vector<8x128xf32>
    tpu.vector_store %arg7[%c0_15, %c0_16], %35 {strides = array<i32>} : memref<8x128xf32, #tpu.memory_space<vmem>>, vector<8x128xf32>,
    %c0_17 = arith.constant 0 : index
    %c0_18 = arith.constant 0 : index
    %37 = vector.load %arg8[%c0_17, %c0_18] : memref<8x128xf32, #tpu.memory_space<vmem>>, vector<8x128xf32>
    tpu.vector_store %arg8[%c0_17, %c0_18], %33 {strides = array<i32>} : memref<8x128xf32, #tpu.memory_space<vmem>>, vector<8x128xf32>,
    return
  }
  func.func @transform_0(%arg0: i32) -> (i32, i32) {
    %c0_i32 = arith.constant 0 : i32
    %c0_i32_0 = arith.constant 0 : i32
    return %arg0, %c0_i32 : i32, i32
  }
  func.func @transform_1(%arg0: i32) -> (i32, i32) {
    %c0_i32 = arith.constant 0 : i32
    %c0_i32_0 = arith.constant 0 : i32
    return %arg0, %c0_i32 : i32, i32
  }
  func.func @transform_2(%arg0: i32) -> (i32, i32) {
    %c0_i32 = arith.constant 0 : i32
    %c0_i32_0 = arith.constant 0 : i32
    return %arg0, %c0_i32 : i32, i32
  }
  func.func @transform_3(%arg0: i32) -> (i32, i32) {
    %c0_i32 = arith.constant 0 : i32
    %c0_i32_0 = arith.constant 0 : i32
    %c0_i32_1 = arith.constant 0 : i32
    return %c0_i32, %c0_i32_0 : i32, i32
  }
  func.func @transform_4(%arg0: i32) -> (i32, i32) {
    %c0_i32 = arith.constant 0 : i32
    %c0_i32_0 = arith.constant 0 : i32
    %c0_i32_1 = arith.constant 0 : i32
    return %c0_i32, %c0_i32_0 : i32, i32
  }
  func.func @transform_5(%arg0: i32) -> (i32, i32) {
    %c0_i32 = arith.constant 0 : i32
    %c0_i32_0 = arith.constant 0 : i32
    %c0_i32_1 = arith.constant 0 : i32
    return %c0_i32, %c0_i32_0 : i32, i32
  }
  func.func @transform_6(%arg0: i32) -> (i32, i32) {
    %c0_i32 = arith.constant 0 : i32
    %c0_i32_0 = arith.constant 0 : i32
    return %arg0, %c0_i32 : i32, i32
  }
  func.func @transform_7(%arg0: i32) -> (i32, i32) {
    %c0_i32 = arith.constant 0 : i32
    %c0_i32_0 = arith.constant 0 : i32
    return %arg0, %c0_i32 : i32, i32
  }
}

</mosaic_0001>

<bundles_post_ra>
// kernel: _cell_step_impl.1
= control target key start
LH: loop header
LB: loop body
LE: loop exit
PB: predicated region body
PF: predicated region fallthrough
CT: control target
= control target key end

     0   :  { %13 = vsyncpa [#allocation3], 0  ;;  %s781_s0 = inlined_call_operand.vmem [shape: f32[8,32], index: 0, kind: input, shape index: {}]   ;;  %s782_s1 = inlined_call_operand.vmem [shape: f32[8,128], index: 1, kind: input, shape index: {}]   ;;  %s783_s2 = inlined_call_operand.vmem [shape: f32[8,128], index: 2, kind: input, shape index: {}, may-alias: {2,7}]   ;;  %s784_s3 = inlined_call_operand.hbm [shape: f32[32,512], index: 3, kind: input, shape index: {}]   ;;  %s785_s4 = inlined_call_operand.hbm [shape: f32[128,512], index: 4, kind: input, shape index: {}]   ;;  %s786_s5 = inlined_call_operand.vmem [shape: f32[1,512], index: 5, kind: input, shape index: {}]   ;;  %s787_s6 = inlined_call_operand.hbm [shape: f32[8,128], index: 6, kind: output, shape index: {0}]   ;;  %s788_s7 = inlined_call_operand.vmem [shape: f32[8,128], index: 7, kind: output, shape index: {1}, may-alias: {2,7}]  }
   0x1   :  { %14 = vsyncpa [#allocation6], 0 }
   0x2   :  { %15 = vsyncpa [#allocation4], 0  ;;  %s680_s24 = smov [#allocation2]   ;;  %s608_s28 = scalar_lea.hbm %s784_s3, 2048 }
   0x3   :  { %s27_s25 = sshll.u32 %s680_s24, 4  ;;  %p609_p0 = scmp.ne.s32.totalorder %s784_s3, %s608_s28  ;;  %s28_s25 = int_to_ptr.vmem [resolvable:$true] %s27_s25 }
   0x4   :  { %p612_p1 = scmp.lt.u32.totalorder %s608_s28, %s784_s3 }
   0x6   :  { %p614_p2 = pnand %p612_p1, %p609_p0 }
   0x8   :  { %617 = shalt.err (!%p614_p2)
}
   0x9   :  { %s618_s10 = scalar_lea.vmem %s28_s25, 2048  ;;  %p623_p4 = scmp.lt.s32.totalorder %s28_s25, %s28_s25 }
   0xa   :  { %p619_p3 = scmp.ne.s32.totalorder %s28_s25, %s618_s10  ;;  %p624_p5 = scmp.lt.s32.totalorder %s618_s10, %s618_s10 }
   0xc   :  { %p625_p6 = por %p624_p5, %p623_p4 }
   0xe   :  { %p626_p7 = pnand %p625_p6, %p619_p3 }
  0x10   :  { %629 = shalt.err (!%p626_p7)
}
  0x11   :  { %s681_s11 = smov 512   ;;  %s682_s12 = smov 32  }
  0x12   :  { %33 = dma.hbm_to_vmem [thread:$0]  %s784_s3, 2048, %s28_s25, [#allocation3], %s681_s11, %s681_s11, %s682_s12  }
  0x13   :  { %s683_s15 = smov [#allocation5]   ;;  %s630_s19 = scalar_lea.hbm %s785_s4, 8192 }
  0x14   :  { %s39_s16 = sshll.u32 %s683_s15, 4  ;;  %p631_p8 = scmp.ne.s32.totalorder %s785_s4, %s630_s19  ;;  %s40_s16 = int_to_ptr.vmem [resolvable:$true] %s39_s16 }
  0x15   :  { %p634_p9 = scmp.lt.u32.totalorder %s630_s19, %s785_s4 }
  0x17   :  { %p636_p10 = pnand %p634_p9, %p631_p8 }
  0x19   :  { %639 = shalt.err (!%p636_p10)
}
  0x1a   :  { %s640_s24 = scalar_lea.vmem %s40_s16, 8192  ;;  %p645_p12 = scmp.lt.s32.totalorder %s40_s16, %s40_s16 }
  0x1b   :  { %p641_p11 = scmp.ne.s32.totalorder %s40_s16, %s640_s24  ;;  %p646_p13 = scmp.lt.s32.totalorder %s640_s24, %s640_s24 }
  0x1d   :  { %p647_p0 = por %p646_p13, %p645_p12 }
  0x1f   :  { %p648_p1 = pnand %p647_p0, %p641_p11 }
  0x21   :  { %651 = shalt.err (!%p648_p1)
}
  0x22   :  { %45 = dma.hbm_to_vmem [thread:$0]  %s785_s4, 8192, %s40_s16, [#allocation6], %s681_s11, %s681_s11, %s682_s12  }
  0x23   :  { %674 = dma.done.wait [#allocation3], 2048  }
  0x24   :  { %675 = vsyncadd [#allocation3], 4294965248 }
  0x25   :  { %676 = dma.done.wait [#allocation6], 8192  }
  0x26   :  { %677 = vsyncadd [#allocation6], 4294959104  ;;  %v684_v0 = vmov 0.0   ;;  %v73_v1 = vld [vmem:[#allocation5 + $0x8] sm:$0xff]  ;;  %v72_v3 = vld [vmem:[#allocation5] sm:$0xff]  ;;  %vm278_vm0 = vcmask 261120  }
  0x27   :  { %200 = vmatprep.mubr.f32.mxu0 %v684_v0  ;;  %271 = vmatprep.mubr.f32.mxu1 %v684_v0  ;;  %v77_v2 = vld [vmem:[#allocation5 + $0x28] sm:$0xff]  ;;  %v76_v5 = vld [vmem:[#allocation5 + $0x20] sm:$0xff]  ;;  %v75_v12 = vld [vmem:[#allocation5 + $0x18] sm:$0xff]  ;;  %s685_s9 = smov [#allocation7]  }
  0x28   :  { %v502_v4 = vpack.c.bf16 %v77_v2, %v73_v1  ;;  %v81_v6 = vld [vmem:[#allocation5 + $0x48] sm:$0xff]  ;;  %v504_v8 = vpack.c.bf16 %v76_v5, %v72_v3  ;;  %v80_v10 = vld [vmem:[#allocation5 + $0x40] sm:$0xff]  ;;  %v79_v13 = vld [vmem:[#allocation5 + $0x38] sm:$0xff]  ;;  %s483_s10 = sshll.u32 %s685_s9, 4  ;;  %s484_s10 = int_to_ptr.vmem [resolvable:$true] %s483_s10 }
  0x29   :  { %v85_v7 = vld [vmem:[#allocation5 + $0x68] sm:$0xff]  ;;  %v84_v11 = vld [vmem:[#allocation5 + $0x60] sm:$0xff]  ;;  %v534_v17 = vpack.c.bf16 %v79_v13, %v75_v12  ;;  %v74_v18 = vld [vmem:[#allocation5 + $0x10] sm:$0xff]  ;;  %p657_p3 = scmp.lt.s32.totalorder %s484_s10, %s484_s10 }
  0x2a   :  { %v506_v9 = vpack.c.bf16 %v85_v7, %v81_v6  ;;  %503 = vmatprep.subr.bf16.mxu0 %v502_v4  ;;  %v89_v14 = vld [vmem:[#allocation5 + $0x88] sm:$0xff]  ;;  %v508_v16 = vpack.c.bf16 %v84_v11, %v80_v10  ;;  %v78_v19 = vld [vmem:[#allocation5 + $0x30] sm:$0xff]  ;;  %v88_v20 = vld [vmem:[#allocation5 + $0x80] sm:$0xff] }
  0x2b   :  { %v93_v15 = vld [vmem:[#allocation5 + $0xa8] sm:$0xff]  ;;  %505 = vmatpush1.bf16.msra.mxu0 %v504_v8  ;;  %v536_v22 = vpack.c.bf16 %v78_v19, %v74_v18  ;;  %v92_v23 = vld [vmem:[#allocation5 + $0xa0] sm:$0xff]  ;;  %v83_v24 = vld [vmem:[#allocation5 + $0x58] sm:$0xff]  ;;  %535 = vmatprep.subr.bf16.mxu1 %v534_v17 }
  0x2c   :  { %507 = vmatprep.subr.bf16.mxu0 %v506_v9  ;;  %v510_v21 = vpack.c.bf16 %v93_v15, %v89_v14  ;;  %v87_v25 = vld [vmem:[#allocation5 + $0x78] sm:$0xff]  ;;  %v97_v27 = vld [vmem:[#allocation5 + $0xc8] sm:$0xff]  ;;  %v82_v29 = vld [vmem:[#allocation5 + $0x50] sm:$0xff]  ;;  %v512_v31 = vpack.c.bf16 %v92_v23, %v88_v20 }
  0x2d   :  { %v538_v26 = vpack.c.bf16 %v87_v25, %v83_v24  ;;  %v101_v28 = vld [vmem:[#allocation5 + $0xe8] sm:$0xff]  ;;  %537 = vmatpush1.bf16.msra.mxu1 %v536_v22  ;;  %v86_v30 = vld [vmem:[#allocation5 + $0x70] sm:$0xff]  ;;  %v96_v33 = vld [vmem:[#allocation5 + $0xc0] sm:$0xff] }
  0x2e   :  { %v540_v32 = vpack.c.bf16 %v86_v30, %v82_v29  ;;  %v91_v34 = vld [vmem:[#allocation5 + $0x98] sm:$0xff]  ;;  %v514_v36 = vpack.c.bf16 %v101_v28, %v97_v27  ;;  %v100_v37 = vld [vmem:[#allocation5 + $0xe0] sm:$0xff]  ;;  %v90_v39 = vld [vmem:[#allocation5 + $0x90] sm:$0xff] }
  0x2f   :  { %509 = vmatpush1.bf16.msra.mxu0 %v508_v16  ;;  %539 = vmatprep.subr.bf16.mxu1 %v538_v26  ;;  %v95_v35 = vld [vmem:[#allocation5 + $0xb8] sm:$0xff]  ;;  %v94_v40 = vld [vmem:[#allocation5 + $0xb0] sm:$0xff]  ;;  %v105_v41 = vld [vmem:[#allocation5 + $0x108] sm:$0xff]  ;;  %v516_v46 = vpack.c.bf16 %v100_v37, %v96_v33 }
  0x30   :  { %511 = vmatprep.subr.bf16.mxu0 %v510_v21  ;;  %v542_v38 = vpack.c.bf16 %v95_v35, %v91_v34  ;;  %v109_v42 = vld [vmem:[#allocation5 + $0x128] sm:$0xff]  ;;  %v99_v43 = vld [vmem:[#allocation5 + $0xd8] sm:$0xff]  ;;  %v544_v44 = vpack.c.bf16 %v94_v40, %v90_v39  ;;  %v104_v47 = vld [vmem:[#allocation5 + $0x100] sm:$0xff] }
  0x31   :  { %541 = vmatpush1.bf16.msra.mxu1 %v540_v32  ;;  %v103_v45 = vld [vmem:[#allocation5 + $0xf8] sm:$0xff]  ;;  %v98_v49 = vld [vmem:[#allocation5 + $0xd0] sm:$0xff]  ;;  %v518_v51 = vpack.c.bf16 %v109_v42, %v105_v41  ;;  %v108_v52 = vld [vmem:[#allocation5 + $0x120] sm:$0xff] }
  0x32   :  { %543 = vmatprep.subr.bf16.mxu1 %v542_v38  ;;  %v546_v48 = vpack.c.bf16 %v103_v45, %v99_v43  ;;  %v102_v50 = vld [vmem:[#allocation5 + $0xf0] sm:$0xff]  ;;  %v107_v53 = vld [vmem:[#allocation5 + $0x118] sm:$0xff]  ;;  %v113_v55 = vld [vmem:[#allocation5 + $0x148] sm:$0xff]  ;;  %v520_v58 = vpack.c.bf16 %v108_v52, %v104_v47 }
  0x33   :  { %513 = vmatpush1.bf16.msra.mxu0 %v512_v31  ;;  %v111_v54 = vld [vmem:[#allocation5 + $0x138] sm:$0xff]  ;;  %v117_v56 = vld [vmem:[#allocation5 + $0x168] sm:$0xff]  ;;  %v548_v57 = vpack.c.bf16 %v102_v50, %v98_v49  ;;  %v112_v59 = vld [vmem:[#allocation5 + $0x140] sm:$0xff] }
  0x34   :  { %515 = vmatprep.subr.bf16.mxu0 %v514_v36  ;;  %v550_v60 = vpack.c.bf16 %v111_v54, %v107_v53  ;;  %v106_v61 = vld [vmem:[#allocation5 + $0x110] sm:$0xff]  ;;  %v522_v63 = vpack.c.bf16 %v117_v56, %v113_v55  ;;  %v116_v1 = vld [vmem:[#allocation5 + $0x160] sm:$0xff]  ;;  %v115_v2 = vld [vmem:[#allocation5 + $0x158] sm:$0xff] }
  0x35   :  { %545 = vmatpush1.bf16.msra.mxu1 %v544_v44  ;;  %v110_v62 = vld [vmem:[#allocation5 + $0x130] sm:$0xff]  ;;  %v119_v3 = vld [vmem:[#allocation5 + $0x178] sm:$0xff]  ;;  %v121_v4 = vld [vmem:[#allocation5 + $0x188] sm:$0xff]  ;;  %v524_v7 = vpack.c.bf16 %v116_v1, %v112_v59 }
  0x36   :  { %547 = vmatprep.subr.bf16.mxu1 %v546_v48  ;;  %v125_v5 = vld [vmem:[#allocation5 + $0x1a8] sm:$0xff]  ;;  %v552_v6 = vpack.c.bf16 %v110_v62, %v106_v61  ;;  %v120_v8 = vld [vmem:[#allocation5 + $0x180] sm:$0xff]  ;;  %v554_v9 = vpack.c.bf16 %v119_v3, %v115_v2  ;;  %v114_v10 = vld [vmem:[#allocation5 + $0x150] sm:$0xff] }
  0x37   :  { %517 = vmatpush1.bf16.msra.mxu0 %v516_v46  ;;  %v118_v11 = vld [vmem:[#allocation5 + $0x170] sm:$0xff]  ;;  %v526_v12 = vpack.c.bf16 %v125_v5, %v121_v4  ;;  %v124_v13 = vld [vmem:[#allocation5 + $0x1a0] sm:$0xff]  ;;  %v123_v14 = vld [vmem:[#allocation5 + $0x198] sm:$0xff] }
  0x38   :  { %519 = vmatprep.subr.bf16.mxu0 %v518_v51  ;;  %v127_v15 = vld [vmem:[#allocation5 + $0x1b8] sm:$0xff]  ;;  %v129_v16 = vld [vmem:[#allocation5 + $0x1c8] sm:$0xff]  ;;  %v556_v18 = vpack.c.bf16 %v118_v11, %v114_v10  ;;  %v528_v19 = vpack.c.bf16 %v124_v13, %v120_v8  ;;  %v128_v20 = vld [vmem:[#allocation5 + $0x1c0] sm:$0xff] }
  0x39   :  { %549 = vmatpush1.bf16.msra.mxu1 %v548_v57  ;;  %v133_v17 = vld [vmem:[#allocation5 + $0x1e8] sm:$0xff]  ;;  %v558_v21 = vpack.c.bf16 %v127_v15, %v123_v14  ;;  %v122_v22 = vld [vmem:[#allocation5 + $0x190] sm:$0xff]  ;;  %v132_v25 = vld [vmem:[#allocation5 + $0x1e0] sm:$0xff] }
  0x3a   :  { %551 = vmatprep.subr.bf16.mxu1 %v550_v60  ;;  %v126_v23 = vld [vmem:[#allocation5 + $0x1b0] sm:$0xff]  ;;  %v530_v24 = vpack.c.bf16 %v133_v17, %v129_v16  ;;  %v131_v26 = vld [vmem:[#allocation5 + $0x1d8] sm:$0xff]  ;;  %v56_v28 = vld [vmem:[#allocation2 + $0x8] sm:$0xff]  ;;  %v532_v31 = vpack.c.bf16 %v132_v25, %v128_v20  ;;  %v426_v60 = vlaneseq }
  0x3b   :  { %521 = vmatpush1.bf16.msra.mxu0 %v520_v58  ;;  %v135_v27 = vld [vmem:[#allocation5 + $0x1f8] sm:$0xff]  ;;  %v60_v29 = vld [vmem:[#allocation2 + $0x28] sm:$0xff]  ;;  %v560_v30 = vpack.c.bf16 %v126_v23, %v122_v22  ;;  %v130_v33 = vld [vmem:[#allocation5 + $0x1d0] sm:$0xff] }
  0x3c   :  { %523 = vmatprep.subr.bf16.mxu0 %v522_v63  ;;  %v562_v32 = vpack.c.bf16 %v135_v27, %v131_v26  ;;  %v134_v34 = vld [vmem:[#allocation5 + $0x1f0] sm:$0xff]  ;;  %v566_v35 = vpack.c.bf16 %v60_v29, %v56_v28  ;;  %v55_v36 = vld [vmem:[#allocation2] sm:$0xff]  ;;  %v64_v38 = vld [vmem:[#allocation2 + $0x48] sm:$0xff]  ;;  %v427_v61 = vshrl.u32 %v426_v60, 7 }
  0x3d   :  { %553 = vmatpush1.bf16.msra.mxu1 %v552_v6  ;;  %v59_v37 = vld [vmem:[#allocation2 + $0x20] sm:$0xff]  ;;  %v68_v39 = vld [vmem:[#allocation2 + $0x68] sm:$0xff]  ;;  %v58_v40 = vld [vmem:[#allocation2 + $0x18] sm:$0xff]  ;;  %v564_v43 = vpack.c.bf16 %v134_v34, %v130_v33 }
  0x3e   :  { %555 = vmatprep.subr.bf16.mxu1 %v554_v9  ;;  %v62_v41 = vld [vmem:[#allocation2 + $0x38] sm:$0xff]  ;;  %v71_v42 = vld [vmem:[%s782_s1] sm:$0xff]  ;;  %v568_v44 = vpack.c.bf16 %v59_v37, %v55_v36  ;;  %v57_v46 = vld [vmem:[#allocation2 + $0x10] sm:$0xff]  ;;  %v570_v48 = vpack.c.bf16 %v68_v39, %v64_v38  ;;  %v428_v62 = vsub.s32 0, %v427_v61  ;;  %v432_v1 = vsub.s32 1, %v427_v61 }
  0x3f   :  { %525 = vmatpush1.bf16.msra.mxu0 %v524_v7  ;;  %v63_v45 = vld [vmem:[#allocation2 + $0x40] sm:$0xff]  ;;  %v61_v47 = vld [vmem:[#allocation2 + $0x30] sm:$0xff]  ;;  %v574_v50 = vpack.c.bf16 %v62_v41, %v58_v40  ;;  %v66_v51 = vld [vmem:[#allocation2 + $0x58] sm:$0xff]  ;;  %v440_v4 = vsub.s32 3, %v427_v61  ;;  %v436_v13 = vsub.s32 2, %v427_v61 }
  0x40   :  { %527 = vmatprep.subr.bf16.mxu0 %v526_v12  ;;  %v67_v49 = vld [vmem:[#allocation2 + $0x60] sm:$0xff]  ;;  %v70_v52 = vld [vmem:[#allocation2 + $0x78] sm:$0xff]  ;;  %v576_v53 = vpack.c.bf16 %v61_v47, %v57_v46  ;;  %v65_v56 = vld [vmem:[#allocation2 + $0x50] sm:$0xff] }
  0x41   :  { %557 = vmatpush1.bf16.msra.mxu1 %v556_v18  ;;  %v572_v54 = vpack.c.bf16 %v67_v49, %v63_v45  ;;  %v578_v55 = vpack.c.bf16 %v70_v52, %v66_v51  ;;  %v69_v57 = vld [vmem:[#allocation2 + $0x70] sm:$0xff]  ;;  %v54_v59 = vld [vmem:[%s781_s0] sm:$0xff] }
  0x42   :  { %559 = vmatprep.subr.bf16.mxu1 %v558_v21  ;;  %v580_v58 = vpack.c.bf16 %v69_v57, %v65_v56  ;;  %v424_v63 = vld [vmem:[%s786_s5] sm:$0xf] }
  0x43   :  { %529 = vmatpush1.bf16.msra.mxu0 %v528_v19  ;;  %v429_v2 = vrot.slane %v424_v63, %v428_v62  ;;  %v441_v12 = vrot.slane %v424_v63, %v440_v4  ;;  %v437_v15 = vrot.slane %v424_v63, %v436_v13 }
  0x44   :  { %531 = vmatprep.subr.bf16.mxu0 %v530_v24  ;;  %v450_v24 = vld [vmem:[%s783_s2] sm:$0xff]  ;;  %s652_s2 = scalar_lea.vmem %s484_s10, 128 }
  0x45   :  { %561 = vmatpush1.bf16.msra.mxu1 %v560_v30  ;;  %p653_p2 = scmp.ne.s32.totalorder %s484_s10, %s652_s2  ;;  %p658_p4 = scmp.lt.s32.totalorder %s652_s2, %s652_s2 }
  0x46   :  { %563 = vmatprep.subr.bf16.mxu1 %v562_v32 }
  0x47   :  { %533 = vmatpush1.bf16.msra.mxu0 %v532_v31  ;;  %p659_p5 = por %p658_p4, %p657_p3 }
  0x48   :  { %567 = vmatprep.subr.bf16.mxu0 %v566_v35 }
  0x49   :  { %565 = vmatpush1.bf16.msra.mxu1 %v564_v43  ;;  %p660_p6 = pnand %p659_p5, %p653_p2 }
  0x4a   :  { %201 = vmatmul.mubr.f32.vlgmr.msra.gmra.mrb[0].mxu0 %v71_v42  ;;  %575 = vmatprep.subr.bf16.mxu1 %v574_v50 }
  0x4b   :  { %569 = vmatpush1.bf16.msra.mxu0 %v568_v44  ;;  %346 = vmatprep.mubr.f32.mxu0 %v684_v0 }
  0x4c   :  { %571 = vmatprep.subr.bf16.mxu0 %v570_v48  ;;  %272 = vmatmul.mubr.f32.vlgmr.msra.gmra.mrb[0].mxu1 %v71_v42 }
  0x4d   :  { %577 = vmatpush1.bf16.msra.mxu1 %v576_v53  ;;  %417 = vmatprep.mubr.f32.mxu1 %v684_v0  ;;  %v433_v0 = vrot.slane %v424_v63, %v432_v1 }
  0x4e   :  { %579 = vmatprep.subr.bf16.mxu1 %v578_v55 }
  0x4f   :  { %573 = vmatpush1.bf16.msra.mxu0 %v572_v54 }
  0x51   :  { %581 = vmatpush1.bf16.msra.mxu1 %v580_v58 }
  0x52   :  { %497 = vmatmul.mubr.msk.f32.vlgmr.msra.gmra.mrb[0].mxu0 %vm278_vm0, %v54_v59 }
  0x54   :  { %498 = vmatmul.mubr.msk.f32.vlgmr.msra.gmra.mrb[0].mxu1 %vm278_vm0, %v54_v59 }
 0x125   :  { %v348_v3 = vpop.f32.mrb[0].mxu0 }
 0x126   :  { %v446_v5 = vadd.f32 %v429_v2, %v348_v3  ;;  %v350_v6 = vpop.f32.mrb[1].mxu0 }
 0x127   :  { %v447_v7 = vadd.f32 %v433_v0, %v350_v6  ;;  %v419_v9 = vpop.f32.mrb[0].mxu1 }
 0x128   :  { %v499_v8 = vmul.f32 -1.442695, %v446_v5  ;;  %v421_v11 = vpop.f32.mrb[1].mxu1  ;;  %v448_v17 = vadd.f32 %v437_v15, %v419_v9 }
 0x129   :  { %v500_v10 = vmul.f32 -1.442695, %v447_v7  ;;  %v449_v14 = vadd.f32 %v441_v12, %v421_v11 }
 0x12a   :  { %592 = vpow2.f32 %v499_v8 }
 0x12b   :  { %594 = vpow2.f32 %v500_v10  ;;  %v501_v16 = vmul.f32 -1.442695, %v449_v14 }
 0x12d   :  { %596 = vpow2.f32 %v501_v16 }
 0x12e   :  { %598 = vtanh.f32 %v448_v17 }
 0x134   :  { %v593_v18 = vpop.eup %592 }
 0x135   :  { %v595_v19 = vpop.eup %594  ;;  %v454_v20 = vadd.f32 1.0, %v593_v18 }
 0x136   :  { %v460_v21 = vadd.f32 1.0, %v595_v19 }
 0x137   :  { %600 = vrcp.f32 %v454_v20  ;;  %v597_v22 = vpop.eup %596 }
 0x138   :  { %602 = vrcp.f32 %v460_v21  ;;  %v599_v23 = vpop.eup %598  ;;  %v467_v28 = vadd.f32 1.0, %v597_v22 }
 0x13a   :  { %604 = vrcp.f32 %v467_v28 }
 0x141   :  { %v601_v25 = vpop.eup %600 }
 0x142   :  { %v603_v26 = vpop.eup %602  ;;  %v470_v27 = vmul.f32 %v601_v25, %v599_v23 }
 0x143   :  { %v471_v29 = vmul.f32 %v603_v26, %v450_v24 }
 0x144   :  { %v605_v31 = vpop.eup %604 }
 0x145   :  { %v472_v30 = vadd.f32 %v471_v29, %v470_v27 }
 0x147   :  { %476 = vst [vmem:[%s788_s7] sm:$0xff] %v472_v30  ;;  %606 = vtanh.f32 %v472_v30 }
 0x151   :  { %v607_v32 = vpop.eup %606 }
 0x152   :  { %v474_v33 = vmul.f32 %v607_v32, %v605_v31 }
 0x154   :  { %475 = vst [vmem:[#allocation7] sm:$0xff] %v474_v33 }
 0x155   :  { %663 = shalt.err (!%p660_p6)
}
 0x156   :  { %s664_s13 = scalar_lea.hbm %s787_s6, 128 }
 0x157   :  { %p665_p7 = scmp.ne.s32.totalorder %s787_s6, %s664_s13  ;;  %p668_p8 = scmp.lt.u32.totalorder %s664_s13, %s787_s6 }
 0x159   :  { %p670_p9 = pnand %p668_p8, %p665_p7 }
 0x15b   :  { %673 = shalt.err (!%p670_p9)
}
 0x15c   :  { %486 = dma.vmem_to_hbm [thread:$0]  %s484_s10, 128, %s787_s6, [#allocation4]  }
 0x15d   :  { %678 = dma.done.wait [#allocation4], 128  }
 0x15e   :  { %679 = vsyncadd [#allocation4], 4294967168 }
 0x15f   :  { %494 = vsyncpa [#allocation3], 1 }
 0x160   :  { %495 = vsyncpa [#allocation6], 1 }
 0x161   :  { %496 = vsyncpa [#allocation4], 1 }

// kernel: _cell_step_impl.1
= control target key start
LH: loop header
LB: loop body
LE: loop exit
PB: predicated region body
PF: predicated region fallthrough
CT: control target
= control target key end

     0   :  { %13 = vsyncpa [#allocation3], 0  ;;  %s781_s0 = inlined_call_operand.vmem [shape: f32[8,32], index: 0, kind: input, shape index: {}]   ;;  %s782_s1 = inlined_call_operand.vmem [shape: f32[8,128], index: 1, kind: input, shape index: {}]   ;;  %s783_s2 = inlined_call_operand.vmem [shape: f32[8,128], index: 2, kind: input, shape index: {}, may-alias: {2,7}]   ;;  %s784_s3 = inlined_call_operand.hbm [shape: f32[32,512], index: 3, kind: input, shape index: {}]   ;;  %s785_s4 = inlined_call_operand.hbm [shape: f32[128,512], index: 4, kind: input, shape index: {}]   ;;  %s786_s5 = inlined_call_operand.vmem [shape: f32[1,512], index: 5, kind: input, shape index: {}]   ;;  %s787_s6 = inlined_call_operand.hbm [shape: f32[8,128], index: 6, kind: output, shape index: {0}]   ;;  %s788_s7 = inlined_call_operand.vmem [shape: f32[8,128], index: 7, kind: output, shape index: {1}, may-alias: {2,7}]  }
   0x1   :  { %14 = vsyncpa [#allocation6], 0 }
   0x2   :  { %15 = vsyncpa [#allocation4], 0  ;;  %s680_s24 = smov [#allocation2]   ;;  %s608_s28 = scalar_lea.hbm %s784_s3, 2048 }
   0x3   :  { %s27_s25 = sshll.u32 %s680_s24, 4  ;;  %p609_p0 = scmp.ne.s32.totalorder %s784_s3, %s608_s28  ;;  %s28_s25 = int_to_ptr.vmem [resolvable:$true] %s27_s25 }
   0x4   :  { %p612_p1 = scmp.lt.u32.totalorder %s608_s28, %s784_s3 }
   0x6   :  { %p614_p2 = pnand %p612_p1, %p609_p0 }
   0x8   :  { %617 = shalt.err (!%p614_p2)
}
   0x9   :  { %s618_s10 = scalar_lea.vmem %s28_s25, 2048  ;;  %p623_p4 = scmp.lt.s32.totalorder %s28_s25, %s28_s25 }
   0xa   :  { %p619_p3 = scmp.ne.s32.totalorder %s28_s25, %s618_s10  ;;  %p624_p5 = scmp.lt.s32.totalorder %s618_s10, %s618_s10 }
   0xc   :  { %p625_p6 = por %p624_p5, %p623_p4 }
   0xe   :  { %p626_p7 = pnand %p625_p6, %p619_p3 }
  0x10   :  { %629 = shalt.err (!%p626_p7)
}
  0x11   :  { %s681_s11 = smov 512   ;;  %s682_s12 = smov 32  }
  0x12   :  { %33 = dma.hbm_to_vmem [thread:$0]  %s784_s3, 2048, %s28_s25, [#allocation3], %s681_s11, %s681_s11, %s682_s12  }
  0x13   :  { %s683_s15 = smov [#allocation5]   ;;  %s630_s19 = scalar_lea.hbm %s785_s4, 8192 }
  0x14   :  { %s39_s16 = sshll.u32 %s683_s15, 4  ;;  %p631_p8 = scmp.ne.s32.totalorder %s785_s4, %s630_s19  ;;  %s40_s16 = int_to_ptr.vmem [resolvable:$true] %s39_s16 }
  0x15   :  { %p634_p9 = scmp.lt.u32.totalorder %s630_s19, %s785_s4 }
  0x17   :  { %p636_p10 = pnand %p634_p9, %p631_p8 }
  0x19   :  { %639 = shalt.err (!%p636_p10)
}
  0x1a   :  { %s640_s24 = scalar_lea.vmem %s40_s16, 8192  ;;  %p645_p12 = scmp.lt.s32.totalorder %s40_s16, %s40_s16 }
  0x1b   :  { %p641_p11 = scmp.ne.s32.totalorder %s40_s16, %s640_s24  ;;  %p646_p13 = scmp.lt.s32.totalorder %s640_s24, %s640_s24 }
  0x1d   :  { %p647_p0 = por %p646_p13, %p645_p12 }
  0x1f   :  { %p648_p1 = pnand %p647_p0, %p641_p11 }
  0x21   :  { %651 = shalt.err (!%p648_p1)
}
  0x22   :  { %45 = dma.hbm_to_vmem [thread:$0]  %s785_s4, 8192, %s40_s16, [#allocation6], %s681_s11, %s681_s11, %s682_s12  }
  0x23   :  { %674 = dma.done.wait [#allocation3], 2048  }
  0x24   :  { %675 = vsyncadd [#allocation3], 4294965248 }
  0x25   :  { %676 = dma.done.wait [#allocation6], 8192  }
  0x26   :  { %677 = vsyncadd [#allocation6], 4294959104  ;;  %v684_v0 = vmov 0.0   ;;  %v73_v1 = vld [vmem:[#allocation5 + $0x8] sm:$0xff]  ;;  %v72_v3 = vld [vmem:[#allocation5] sm:$0xff]  ;;  %vm278_vm0 = vcmask 261120  }
  0x27   :  { %200 = vmatprep.mubr.f32.mxu0 %v684_v0  ;;  %271 = vmatprep.mubr.f32.mxu1 %v684_v0  ;;  %v77_v2 = vld [vmem:[#allocation5 + $0x28] sm:$0xff]  ;;  %v76_v5 = vld [vmem:[#allocation5 + $0x20] sm:$0xff]  ;;  %v75_v12 = vld [vmem:[#allocation5 + $0x18] sm:$0xff]  ;;  %s685_s9 = smov [#allocation7]  }
  0x28   :  { %v502_v4 = vpack.c.bf16 %v77_v2, %v73_v1  ;;  %v81_v6 = vld [vmem:[#allocation5 + $0x48] sm:$0xff]  ;;  %v504_v8 = vpack.c.bf16 %v76_v5, %v72_v3  ;;  %v80_v10 = vld [vmem:[#allocation5 + $0x40] sm:$0xff]  ;;  %v79_v13 = vld [vmem:[#allocation5 + $0x38] sm:$0xff]  ;;  %s483_s10 = sshll.u32 %s685_s9, 4  ;;  %s484_s10 = int_to_ptr.vmem [resolvable:$true] %s483_s10 }
  0x29   :  { %v85_v7 = vld [vmem:[#allocation5 + $0x68] sm:$0xff]  ;;  %v84_v11 = vld [vmem:[#allocation5 + $0x60] sm:$0xff]  ;;  %v534_v17 = vpack.c.bf16 %v79_v13, %v75_v12  ;;  %v74_v18 = vld [vmem:[#allocation5 + $0x10] sm:$0xff]  ;;  %p657_p3 = scmp.lt.s32.totalorder %s484_s10, %s484_s10 }
  0x2a   :  { %v506_v9 = vpack.c.bf16 %v85_v7, %v81_v6  ;;  %503 = vmatprep.subr.bf16.mxu0 %v502_v4  ;;  %v89_v14 = vld [vmem:[#allocation5 + $0x88] sm:$0xff]  ;;  %v508_v16 = vpack.c.bf16 %v84_v11, %v80_v10  ;;  %v78_v19 = vld [vmem:[#allocation5 + $0x30] sm:$0xff]  ;;  %v88_v20 = vld [vmem:[#allocation5 + $0x80] sm:$0xff] }
  0x2b   :  { %v93_v15 = vld [vmem:[#allocation5 + $0xa8] sm:$0xff]  ;;  %505 = vmatpush1.bf16.msra.mxu0 %v504_v8  ;;  %v536_v22 = vpack.c.bf16 %v78_v19, %v74_v18  ;;  %v92_v23 = vld [vmem:[#allocation5 + $0xa0] sm:$0xff]  ;;  %v83_v24 = vld [vmem:[#allocation5 + $0x58] sm:$0xff]  ;;  %535 = vmatprep.subr.bf16.mxu1 %v534_v17 }
  0x2c   :  { %507 = vmatprep.subr.bf16.mxu0 %v506_v9  ;;  %v510_v21 = vpack.c.bf16 %v93_v15, %v89_v14  ;;  %v87_v25 = vld [vmem:[#allocation5 + $0x78] sm:$0xff]  ;;  %v97_v27 = vld [vmem:[#allocation5 + $0xc8] sm:$0xff]  ;;  %v82_v29 = vld [vmem:[#allocation5 + $0x50] sm:$0xff]  ;;  %v512_v31 = vpack.c.bf16 %v92_v23, %v88_v20 }
  0x2d   :  { %v538_v26 = vpack.c.bf16 %v87_v25, %v83_v24  ;;  %v101_v28 = vld [vmem:[#allocation5 + $0xe8] sm:$0xff]  ;;  %537 = vmatpush1.bf16.msra.mxu1 %v536_v22  ;;  %v86_v30 = vld [vmem:[#allocation5 + $0x70] sm:$0xff]  ;;  %v96_v33 = vld [vmem:[#allocation5 + $0xc0] sm:$0xff] }
  0x2e   :  { %v540_v32 = vpack.c.bf16 %v86_v30, %v82_v29  ;;  %v91_v34 = vld [vmem:[#allocation5 + $0x98] sm:$0xff]  ;;  %v514_v36 = vpack.c.bf16 %v101_v28, %v97_v27  ;;  %v100_v37 = vld [vmem:[#allocation5 + $0xe0] sm:$0xff]  ;;  %v90_v39 = vld [vmem:[#allocation5 + $0x90] sm:$0xff] }
  0x2f   :  { %509 = vmatpush1.bf16.msra.mxu0 %v508_v16  ;;  %539 = vmatprep.subr.bf16.mxu1 %v538_v26  ;;  %v95_v35 = vld [vmem:[#allocation5 + $0xb8] sm:$0xff]  ;;  %v94_v40 = vld [vmem:[#allocation5 + $0xb0] sm:$0xff]  ;;  %v105_v41 = vld [vmem:[#allocation5 + $0x108] sm:$0xff]  ;;  %v516_v46 = vpack.c.bf16 %v100_v37, %v96_v33 }
  0x30   :  { %511 = vmatprep.subr.bf16.mxu0 %v510_v21  ;;  %v542_v38 = vpack.c.bf16 %v95_v35, %v91_v34  ;;  %v109_v42 = vld [vmem:[#allocation5 + $0x128] sm:$0xff]  ;;  %v99_v43 = vld [vmem:[#allocation5 + $0xd8] sm:$0xff]  ;;  %v544_v44 = vpack.c.bf16 %v94_v40, %v90_v39  ;;  %v104_v47 = vld [vmem:[#allocation5 + $0x100] sm:$0xff] }
  0x31   :  { %541 = vmatpush1.bf16.msra.mxu1 %v540_v32  ;;  %v103_v45 = vld [vmem:[#allocation5 + $0xf8] sm:$0xff]  ;;  %v98_v49 = vld [vmem:[#allocation5 + $0xd0] sm:$0xff]  ;;  %v518_v51 = vpack.c.bf16 %v109_v42, %v105_v41  ;;  %v108_v52 = vld [vmem:[#allocation5 + $0x120] sm:$0xff] }
  0x32   :  { %543 = vmatprep.subr.bf16.mxu1 %v542_v38  ;;  %v546_v48 = vpack.c.bf16 %v103_v45, %v99_v43  ;;  %v102_v50 = vld [vmem:[#allocation5 + $0xf0] sm:$0xff]  ;;  %v107_v53 = vld [vmem:[#allocation5 + $0x118] sm:$0xff]  ;;  %v113_v55 = vld [vmem:[#allocation5 + $0x148] sm:$0xff]  ;;  %v520_v58 = vpack.c.bf16 %v108_v52, %v104_v47 }
  0x33   :  { %513 = vmatpush1.bf16.msra.mxu0 %v512_v31  ;;  %v111_v54 = vld [vmem:[#allocation5 + $0x138] sm:$0xff]  ;;  %v117_v56 = vld [vmem:[#allocation5 + $0x168] sm:$0xff]  ;;  %v548_v57 = vpack.c.bf16 %v102_v50, %v98_v49  ;;  %v112_v59 = vld [vmem:[#allocation5 + $0x140] sm:$0xff] }
  0x34   :  { %515 = vmatprep.subr.bf16.mxu0 %v514_v36  ;;  %v550_v60 = vpack.c.bf16 %v111_v54, %v107_v53  ;;  %v106_v61 = vld [vmem:[#allocation5 + $0x110] sm:$0xff]  ;;  %v522_v63 = vpack.c.bf16 %v117_v56, %v113_v55  ;;  %v116_v1 = vld [vmem:[#allocation5 + $0x160] sm:$0xff]  ;;  %v115_v2 = vld [vmem:[#allocation5 + $0x158] sm:$0xff] }
  0x35   :  { %545 = vmatpush1.bf16.msra.mxu1 %v544_v44  ;;  %v110_v62 = vld [vmem:[#allocation5 + $0x130] sm:$0xff]  ;;  %v119_v3 = vld [vmem:[#allocation5 + $0x178] sm:$0xff]  ;;  %v121_v4 = vld [vmem:[#allocation5 + $0x188] sm:$0xff]  ;;  %v524_v7 = vpack.c.bf16 %v116_v1, %v112_v59 }
  0x36   :  { %547 = vmatprep.subr.bf16.mxu1 %v546_v48  ;;  %v125_v5 = vld [vmem:[#allocation5 + $0x1a8] sm:$0xff]  ;;  %v552_v6 = vpack.c.bf16 %v110_v62, %v106_v61  ;;  %v120_v8 = vld [vmem:[#allocation5 + $0x180] sm:$0xff]  ;;  %v554_v9 = vpack.c.bf16 %v119_v3, %v115_v2  ;;  %v114_v10 = vld [vmem:[#allocation5 + $0x150] sm:$0xff] }
  0x37   :  { %517 = vmatpush1.bf16.msra.mxu0 %v516_v46  ;;  %v118_v11 = vld [vmem:[#allocation5 + $0x170] sm:$0xff]  ;;  %v526_v12 = vpack.c.bf16 %v125_v5, %v121_v4  ;;  %v124_v13 = vld [vmem:[#allocation5 + $0x1a0] sm:$0xff]  ;;  %v123_v14 = vld [vmem:[#allocation5 + $0x198] sm:$0xff] }
  0x38   :  { %519 = vmatprep.subr.bf16.mxu0 %v518_v51  ;;  %v127_v15 = vld [vmem:[#allocation5 + $0x1b8] sm:$0xff]  ;;  %v129_v16 = vld [vmem:[#allocation5 + $0x1c8] sm:$0xff]  ;;  %v556_v18 = vpack.c.bf16 %v118_v11, %v114_v10  ;;  %v528_v19 = vpack.c.bf16 %v124_v13, %v120_v8  ;;  %v128_v20 = vld [vmem:[#allocation5 + $0x1c0] sm:$0xff] }
  0x39   :  { %549 = vmatpush1.bf16.msra.mxu1 %v548_v57  ;;  %v133_v17 = vld [vmem:[#allocation5 + $0x1e8] sm:$0xff]  ;;  %v558_v21 = vpack.c.bf16 %v127_v15, %v123_v14  ;;  %v122_v22 = vld [vmem:[#allocation5 + $0x190] sm:$0xff]  ;;  %v132_v25 = vld [vmem:[#allocation5 + $0x1e0] sm:$0xff] }
  0x3a   :  { %551 = vmatprep.subr.bf16.mxu1 %v550_v60  ;;  %v126_v23 = vld [vmem:[#allocation5 + $0x1b0] sm:$0xff]  ;;  %v530_v24 = vpack.c.bf16 %v133_v17, %v129_v16  ;;  %v131_v26 = vld [vmem:[#allocation5 + $0x1d8] sm:$0xff]  ;;  %v56_v28 = vld [vmem:[#allocation2 + $0x8] sm:$0xff]  ;;  %v532_v31 = vpack.c.bf16 %v132_v25, %v128_v20  ;;  %v426_v60 = vlaneseq }
  0x3b   :  { %521 = vmatpush1.bf16.msra.mxu0 %v520_v58  ;;  %v135_v27 = vld [vmem:[#allocation5 + $0x1f8] sm:$0xff]  ;;  %v60_v29 = vld [vmem:[#allocation2 + $0x28] sm:$0xff]  ;;  %v560_v30 = vpack.c.bf16 %v126_v23, %v122_v22  ;;  %v130_v33 = vld [vmem:[#allocation5 + $0x1d0] sm:$0xff] }
  0x3c   :  { %523 = vmatprep.subr.bf16.mxu0 %v522_v63  ;;  %v562_v32 = vpack.c.bf16 %v135_v27, %v131_v26  ;;  %v134_v34 = vld [vmem:[#allocation5 + $0x1f0] sm:$0xff]  ;;  %v566_v35 = vpack.c.bf16 %v60_v29, %v56_v28  ;;  %v55_v36 = vld [vmem:[#allocation2] sm:$0xff]  ;;  %v64_v38 = vld [vmem:[#allocation2 + $0x48] sm:$0xff]  ;;  %v427_v61 = vshrl.u32 %v426_v60, 7 }
  0x3d   :  { %553 = vmatpush1.bf16.msra.mxu1 %v552_v6  ;;  %v59_v37 = vld [vmem:[#allocation2 + $0x20] sm:$0xff]  ;;  %v68_v39 = vld [vmem:[#allocation2 + $0x68] sm:$0xff]  ;;  %v58_v40 = vld [vmem:[#allocation2 + $0x18] sm:$0xff]  ;;  %v564_v43 = vpack.c.bf16 %v134_v34, %v130_v33 }
  0x3e   :  { %555 = vmatprep.subr.bf16.mxu1 %v554_v9  ;;  %v62_v41 = vld [vmem:[#allocation2 + $0x38] sm:$0xff]  ;;  %v71_v42 = vld [vmem:[%s782_s1] sm:$0xff]  ;;  %v568_v44 = vpack.c.bf16 %v59_v37, %v55_v36  ;;  %v57_v46 = vld [vmem:[#allocation2 + $0x10] sm:$0xff]  ;;  %v570_v48 = vpack.c.bf16 %v68_v39, %v64_v38  ;;  %v428_v62 = vsub.s32 0, %v427_v61  ;;  %v432_v1 = vsub.s32 1, %v427_v61 }
  0x3f   :  { %525 = vmatpush1.bf16.msra.mxu0 %v524_v7  ;;  %v63_v45 = vld [vmem:[#allocation2 + $0x40] sm:$0xff]  ;;  %v61_v47 = vld [vmem:[#allocation2 + $0x30] sm:$0xff]  ;;  %v574_v50 = vpack.c.bf16 %v62_v41, %v58_v40  ;;  %v66_v51 = vld [vmem:[#allocation2 + $0x58] sm:$0xff]  ;;  %v440_v4 = vsub.s32 3, %v427_v61  ;;  %v436_v13 = vsub.s32 2, %v427_v61 }
  0x40   :  { %527 = vmatprep.subr.bf16.mxu0 %v526_v12  ;;  %v67_v49 = vld [vmem:[#allocation2 + $0x60] sm:$0xff]  ;;  %v70_v52 = vld [vmem:[#allocation2 + $0x78] sm:$0xff]  ;;  %v576_v53 = vpack.c.bf16 %v61_v47, %v57_v46  ;;  %v65_v56 = vld [vmem:[#allocation2 + $0x50] sm:$0xff] }
  0x41   :  { %557 = vmatpush1.bf16.msra.mxu1 %v556_v18  ;;  %v572_v54 = vpack.c.bf16 %v67_v49, %v63_v45  ;;  %v578_v55 = vpack.c.bf16 %v70_v52, %v66_v51  ;;  %v69_v57 = vld [vmem:[#allocation2 + $0x70] sm:$0xff]  ;;  %v54_v59 = vld [vmem:[%s781_s0] sm:$0xff] }
  0x42   :  { %559 = vmatprep.subr.bf16.mxu1 %v558_v21  ;;  %v580_v58 = vpack.c.bf16 %v69_v57, %v65_v56  ;;  %v424_v63 = vld [vmem:[%s786_s5] sm:$0xf] }
  0x43   :  { %529 = vmatpush1.bf16.msra.mxu0 %v528_v19  ;;  %v429_v2 = vrot.slane %v424_v63, %v428_v62  ;;  %v441_v12 = vrot.slane %v424_v63, %v440_v4  ;;  %v437_v15 = vrot.slane %v424_v63, %v436_v13 }
  0x44   :  { %531 = vmatprep.subr.bf16.mxu0 %v530_v24  ;;  %v450_v24 = vld [vmem:[%s783_s2] sm:$0xff]  ;;  %s652_s2 = scalar_lea.vmem %s484_s10, 128 }
  0x45   :  { %561 = vmatpush1.bf16.msra.mxu1 %v560_v30  ;;  %p653_p2 = scmp.ne.s32.totalorder %s484_s10, %s652_s2  ;;  %p658_p4 = scmp.lt.s32.totalorder %s652_s2, %s652_s2 }
  0x46   :  { %563 = vmatprep.subr.bf16.mxu1 %v562_v32 }
  0x47   :  { %533 = vmatpush1.bf16.msra.mxu0 %v532_v31  ;;  %p659_p5 = por %p658_p4, %p657_p3 }
  0x48   :  { %567 = vmatprep.subr.bf16.mxu0 %v566_v35 }
  0x49   :  { %565 = vmatpush1.bf16.msra.mxu1 %v564_v43  ;;  %p660_p6 = pnand %p659_p5, %p653_p2 }
  0x4a   :  { %201 = vmatmul.mubr.f32.vlgmr.msra.gmra.mrb[0].mxu0 %v71_v42  ;;  %575 = vmatprep.subr.bf16.mxu1 %v574_v50 }
  0x4b   :  { %569 = vmatpush1.bf16.msra.mxu0 %v568_v44  ;;  %346 = vmatprep.mubr.f32.mxu0 %v684_v0 }
  0x4c   :  { %571 = vmatprep.subr.bf16.mxu0 %v570_v48  ;;  %272 = vmatmul.mubr.f32.vlgmr.msra.gmra.mrb[0].mxu1 %v71_v42 }
  0x4d   :  { %577 = vmatpush1.bf16.msra.mxu1 %v576_v53  ;;  %417 = vmatprep.mubr.f32.mxu1 %v684_v0  ;;  %v433_v0 = vrot.slane %v424_v63, %v432_v1 }
  0x4e   :  { %579 = vmatprep.subr.bf16.mxu1 %v578_v55 }
  0x4f   :  { %573 = vmatpush1.bf16.msra.mxu0 %v572_v54 }
  0x51   :  { %581 = vmatpush1.bf16.msra.mxu1 %v580_v58 }
  0x52   :  { %497 = vmatmul.mubr.msk.f32.vlgmr.msra.gmra.mrb[0].mxu0 %vm278_vm0, %v54_v59 }
  0x54   :  { %498 = vmatmul.mubr.msk.f32.vlgmr.msra.gmra.mrb[0].mxu1 %vm278_vm0, %v54_v59 }
 0x125   :  { %v348_v3 = vpop.f32.mrb[0].mxu0 }
 0x126   :  { %v446_v5 = vadd.f32 %v429_v2, %v348_v3  ;;  %v350_v6 = vpop.f32.mrb[1].mxu0 }
 0x127   :  { %v447_v7 = vadd.f32 %v433_v0, %v350_v6  ;;  %v419_v9 = vpop.f32.mrb[0].mxu1 }
 0x128   :  { %v499_v8 = vmul.f32 -1.442695, %v446_v5  ;;  %v421_v11 = vpop.f32.mrb[1].mxu1  ;;  %v448_v17 = vadd.f32 %v437_v15, %v419_v9 }
 0x129   :  { %v500_v10 = vmul.f32 -1.442695, %v447_v7  ;;  %v449_v14 = vadd.f32 %v441_v12, %v421_v11 }
 0x12a   :  { %592 = vpow2.f32 %v499_v8 }
 0x12b   :  { %594 = vpow2.f32 %v500_v10  ;;  %v501_v16 = vmul.f32 -1.442695, %v449_v14 }
 0x12d   :  { %596 = vpow2.f32 %v501_v16 }
 0x12e   :  { %598 = vtanh.f32 %v448_v17 }
 0x134   :  { %v593_v18 = vpop.eup %592 }
 0x135   :  { %v595_v19 = vpop.eup %594  ;;  %v454_v20 = vadd.f32 1.0, %v593_v18 }
 0x136   :  { %v460_v21 = vadd.f32 1.0, %v595_v19 }
 0x137   :  { %600 = vrcp.f32 %v454_v20  ;;  %v597_v22 = vpop.eup %596 }
 0x138   :  { %602 = vrcp.f32 %v460_v21  ;;  %v599_v23 = vpop.eup %598  ;;  %v467_v28 = vadd.f32 1.0, %v597_v22 }
 0x13a   :  { %604 = vrcp.f32 %v467_v28 }
 0x141   :  { %v601_v25 = vpop.eup %600 }
 0x142   :  { %v603_v26 = vpop.eup %602  ;;  %v470_v27 = vmul.f32 %v601_v25, %v599_v23 }
 0x143   :  { %v471_v29 = vmul.f32 %v603_v26, %v450_v24 }
 0x144   :  { %v605_v31 = vpop.eup %604 }
 0x145   :  { %v472_v30 = vadd.f32 %v471_v29, %v470_v27 }
 0x147   :  { %476 = vst [vmem:[%s788_s7] sm:$0xff] %v472_v30  ;;  %606 = vtanh.f32 %v472_v30 }
 0x151   :  { %v607_v32 = vpop.eup %606 }
 0x152   :  { %v474_v33 = vmul.f32 %v607_v32, %v605_v31 }
 0x154   :  { %475 = vst [vmem:[#allocation7] sm:$0xff] %v474_v33 }
 0x155   :  { %663 = shalt.err (!%p660_p6)
}
 0x156   :  { %s664_s13 = scalar_lea.hbm %s787_s6, 128 }
 0x157   :  { %p665_p7 = scmp.ne.s32.totalorder %s787_s6, %s664_s13  ;;  %p668_p8 = scmp.lt.u32.totalorder %s664_s13, %s787_s6 }
 0x159   :  { %p670_p9 = pnand %p668_p8, %p665_p7 }
 0x15b   :  { %673 = shalt.err (!%p670_p9)
}
 0x15c   :  { %486 = dma.vmem_to_hbm [thread:$0]  %s484_s10, 128, %s787_s6, [#allocation4]  }
 0x15d   :  { %678 = dma.done.wait [#allocation4], 128  }
 0x15e   :  { %679 = vsyncadd [#allocation4], 4294967168 }
 0x15f   :  { %494 = vsyncpa [#allocation3], 1 }
 0x160   :  { %495 = vsyncpa [#allocation6], 1 }
 0x161   :  { %496 = vsyncpa [#allocation4], 1 }

</bundles_post_ra>
